<compile_context>
chip_gen: v7x
topology: tpu7x:2x2x1
jax: 0.10.0
libtpu: 0.0.40
codegen_flags: <defaults>
</compile_context>

<pallas_src>
import functools

import jax
import jax.numpy as jnp
from jax.experimental import pallas as pl
from jax.experimental.pallas import tpu as pltpu


def _round_up(x, m):
    return ((x + m - 1) // m) * m


def _pick_tile(b, base, cap):
    """Smallest power-of-two multiple of `base` >= min(b, cap), capped at cap."""
    t = base
    while t < min(cap, b):
        t *= 2
    return min(t, cap)


def _triplet_tile_kernel(photo_i_ref, sketch_j_ref, photo_j_ref, out_ref, acc_ref,
                         *, m, batch, cols, tm, tn):
    i = pl.program_id(0)
    j = pl.program_id(1)

    @pl.when(j == 0)
    def _():
        acc_ref[...] = jnp.zeros_like(acc_ref)

    p_i = photo_i_ref[...]          # (TM, D), native dtype -> MXU
    s_j = sketch_j_ref[...]         # (TN, D)
    p_j = photo_j_ref[...]          # (TN, D)

    # photo[i] . sketch[j] -- contraction over D expressed directly (no explicit
    # transpose of the sketch tile), f32 accumulation on the MXU.
    cross = jax.lax.dot_general(
        p_i, s_j, (((1,), (1,)), ((), ())),
        preferred_element_type=jnp.float32)                     # (TM, TN)

    p_i_f = p_i.astype(jnp.float32)
    s_j_f = s_j.astype(jnp.float32)
    p_j_f = p_j.astype(jnp.float32)

    p_sq = jnp.sum(p_i_f * p_i_f, axis=1, keepdims=True)        # (TM, 1)
    s_sq = jnp.sum(s_j_f * s_j_f, axis=1, keepdims=True)        # (TN, 1)
    dpos = s_j_f - p_j_f
    pos_sq = jnp.sum(dpos * dpos, axis=1, keepdims=True)        # (TN, 1)

    s_sq_row = jnp.transpose(s_sq)                               # (1, TN)
    pos_row = jnp.sqrt(jnp.transpose(pos_sq))                    # (1, TN)

    # NOTE: the ||a||^2 + ||b||^2 - 2 a.b expansion can lose precision for
    # near-identical rows; the clamp keeps the argument of sqrt >= 0.
    neg_sq = p_sq + s_sq_row - 2.0 * cross
    neg = jnp.sqrt(jnp.maximum(neg_sq, 0.0))                     # (TM, TN)

    tl = pos_row - neg + jnp.float32(m)
    tl = jnp.maximum(tl, 0.0)                                    # relu

    # Fused mask: diagonal (i == j), PyTorch's [:, :n] column limit, and
    # row/column zero-padding -- indexed by GLOBAL ids, single select.
    rows_g = i * tm + jax.lax.broadcasted_iota(jnp.int32, (tm, 1), 0)
    cols_g = j * tn + jax.lax.broadcasted_iota(jnp.int32, (1, tn), 1)
    valid = (rows_g != cols_g) & (rows_g < batch) & (cols_g < cols)
    contrib = jnp.where(valid, tl, 0.0)

    acc_ref[...] += jnp.sum(contrib, axis=1, keepdims=True)      # (TM, 1)

    @pl.when(j == pl.num_programs(1) - 1)
    def _():
        out_ref[...] = acc_ref[...]


def triplet_loss_pallas(sketch, photo, m=0.3, n=10000):
    """Pallas implementation of TripletLoss(d=2, n=n).forward(sketch, photo, m)."""
    # TODO(synk): d=1 / d=0 branches of the PyTorch module are not implemented
    #             (d=2 is the module default and the spec'd forward path here).
    B, D = sketch.shape
    assert photo.shape == (B, D)
    cols = min(int(n), B)   # PyTorch [:, :n] column slice
    # TODO(synk): n == 0 yields NaN (0/0), matching torch.mean over an empty dim.

    # Row tiles in multiples of 8 sublanes, column tiles in multiples of 128
    # lanes; caps keep a handful of (TM, TN) f32 intermediates at a few MiB.
    tm = _pick_tile(B, 8, 256)
    tn = _pick_tile(B, 128, 512)
    bp_r = _round_up(B, tm)
    bp_c = _round_up(B, tn)

    photo_rows = jnp.pad(photo, ((0, bp_r - B), (0, 0)))
    sketch_cols = jnp.pad(sketch, ((0, bp_c - B), (0, 0)))
    photo_cols = jnp.pad(photo, ((0, bp_c - B), (0, 0)))

    n_i = bp_r // tm
    n_j = bp_c // tn

    kernel = functools.partial(
        _triplet_tile_kernel, m=float(m), batch=B, cols=cols, tm=tm, tn=tn)

    row_sums = pl.pallas_call(
        kernel,
        out_shape=jax.ShapeDtypeStruct((bp_r, 1), jnp.float32),
        grid=(n_i, n_j),
        in_specs=[
            pl.BlockSpec((tm, D), lambda i, j: (i, 0)),   # photo rows   (i)
            pl.BlockSpec((tn, D), lambda i, j: (j, 0)),   # sketch cols  (j)
            pl.BlockSpec((tn, D), lambda i, j: (j, 0)),   # photo cols   (j), for pos
        ],
        out_specs=pl.BlockSpec((tm, 1), lambda i, j: (i, 0)),
        scratch_shapes=[pltpu.VMEM((tm, 1), jnp.float32)],
        compiler_params=pltpu.CompilerParams(
            dimension_semantics=("parallel", "arbitrary"),
            vmem_limit_bytes=32 * 1024 * 1024,
        ),
    )(photo_rows, sketch_cols, photo_cols)

    # Tiny final reduction in plain XLA (padded rows contribute exact zeros).
    # mean(mean(tl[:, :cols], axis=1)) == sum / (B * cols).
    return jnp.sum(row_sums) / jnp.float32(B * cols)


def _triplet_loss_ref(sketch, photo, m=0.3, n=10000):
    """Pure-JAX reference mirroring the PyTorch forward (d=2)."""
    s = sketch.astype(jnp.float32)
    p = photo.astype(jnp.float32)
    B = s.shape[0]
    pos = jnp.sqrt(jnp.sum((s - p) ** 2, axis=1))                     # (B,)
    neg = jnp.sqrt(jnp.sum((s[None, :, :] - p[:, None, :]) ** 2, 2))  # (B, B)
    tl = pos[None, :] - neg + m
    tl = tl * (1.0 - jnp.eye(B, dtype=jnp.float32))
    tl = jax.nn.relu(tl)[:, : min(n, B)]
    return jnp.mean(jnp.mean(tl, axis=1))


if __name__ == "__main__":
    key = jax.random.PRNGKey(0)
    k1, k2, k3, k4 = jax.random.split(key, 4)

    # Small shapes consistent with the module: a batch of feature vectors.
    B, D = 8, 32
    sketch = jax.random.normal(k1, (B, D), dtype=jnp.float32)
    photo = jax.random.normal(k2, (B, D), dtype=jnp.float32)

    loss = jax.block_until_ready(triplet_loss_pallas(sketch, photo, m=0.3, n=10000))
    ref = jax.block_until_ready(_triplet_loss_ref(sketch, photo, m=0.3, n=10000))
    assert jnp.isfinite(loss), "non-finite loss"
    assert jnp.allclose(loss, ref, atol=1e-4, rtol=1e-4), (loss, ref)

    # Second case: B not tile-aligned and n < B (exercises padding + column mask).
    B2, D2 = 20, 16
    sketch2 = jax.random.normal(k3, (B2, D2), dtype=jnp.float32)
    photo2 = jax.random.normal(k4, (B2, D2), dtype=jnp.float32)
    loss2 = jax.block_until_ready(triplet_loss_pallas(sketch2, photo2, m=0.3, n=5))
    ref2 = jax.block_until_ready(_triplet_loss_ref(sketch2, photo2, m=0.3, n=5))
    assert jnp.isfinite(loss2), "non-finite loss (case 2)"
    assert jnp.allclose(loss2, ref2, atol=1e-4, rtol=1e-4), (loss2, ref2)

    print("KERNEL_OK")
</pallas_src>

<mosaic_0001>
module attributes {stable_mosaic.version = 11 : i64} {
  func.func @_triplet_tile_kernel(%arg0: i32, %arg1: i32, %arg2: memref<8x32xf32, #tpu.memory_space<vmem>>, %arg3: memref<128x32xf32, #tpu.memory_space<vmem>>, %arg4: memref<128x32xf32, #tpu.memory_space<vmem>>, %arg5: memref<8x1xf32, #tpu.memory_space<vmem>>, %arg6: memref<8x1xf32, #tpu.memory_space<vmem>>) attributes {dimension_semantics = [#tpu.dimension_semantics<parallel>, #tpu.dimension_semantics<arbitrary>], iteration_bounds = array<i64: 1, 1>, scalar_prefetch = 0 : i64, scratch_operands = 1 : i64, tpu.core_type = #tpu.core_type<tc>, window_params = [{transform_indices = @transform_0, window_bounds = array<i64: 8, 32>}, {transform_indices = @transform_1, window_bounds = array<i64: 128, 32>}, {transform_indices = @transform_2, window_bounds = array<i64: 128, 32>}, {transform_indices = @transform_3, window_bounds = array<i64: 8, 1>}]} {
    %c0_i32 = arith.constant 0 : i32
    %0 = arith.cmpi eq, %arg1, %c0_i32 : i32
    %1 = arith.extui %0 : i1 to i32
    %c0_i32_0 = arith.constant 0 : i32
    %2 = arith.cmpi ne, %1, %c0_i32_0 : i32
    scf.if %2 {
      %cst_23 = arith.constant 0.000000e+00 : f32
      %64 = vector.broadcast %cst_23 : f32 to vector<8x1xf32>
      %c0_24 = arith.constant 0 : index
      %c0_25 = arith.constant 0 : index
      %65 = vector.load %arg6[%c0_24, %c0_25] : memref<8x1xf32, #tpu.memory_space<vmem>>, vector<8x1xf32>
      tpu.vector_store %arg6[%c0_24, %c0_25], %64 {strides = array<i32>} : memref<8x1xf32, #tpu.memory_space<vmem>>, vector<8x1xf32>,
    } else {
    }
    %c0 = arith.constant 0 : index
    %c0_1 = arith.constant 0 : index
    %3 = vector.load %arg2[%c0, %c0_1] : memref<8x32xf32, #tpu.memory_space<vmem>>, vector<8x32xf32>
    %c0_2 = arith.constant 0 : index
    %c0_3 = arith.constant 0 : index
    %4 = vector.load %arg3[%c0_2, %c0_3] : memref<128x32xf32, #tpu.memory_space<vmem>>, vector<128x32xf32>
    %c0_4 = arith.constant 0 : index
    %c0_5 = arith.constant 0 : index
    %5 = vector.load %arg4[%c0_4, %c0_5] : memref<128x32xf32, #tpu.memory_space<vmem>>, vector<128x32xf32>
    %cst = arith.constant dense<0.000000e+00> : vector<8x128xf32>
    %6 = tpu.matmul %3, %4, %cst {dimension_numbers = #tpu.dot_dimension_numbers<[1], [1], [0], [0], [0, 0, 1, 0], [], []>} : vector<8x32xf32>, vector<128x32xf32>, vector<8x128xf32> -> vector<8x128xf32>
    %7 = arith.mulf %3, %3 : vector<8x32xf32>
    %cst_6 = arith.constant dense<0.000000e+00> : vector<8xf32>
    %8 = vector.multi_reduction <add>, %7, %cst_6 [1] : vector<8x32xf32> to vector<8xf32>
    %9 = vector.shape_cast %8 : vector<8xf32> to vector<8x1xf32>
    %10 = arith.mulf %4, %4 : vector<128x32xf32>
    %cst_7 = arith.constant dense<0.000000e+00> : vector<128xf32>
    %11 = vector.multi_reduction <add>, %10, %cst_7 [1] : vector<128x32xf32> to vector<128xf32>
    %12 = vector.shape_cast %11 : vector<128xf32> to vector<128x1xf32>
    %13 = arith.subf %4, %5 : vector<128x32xf32>
    %14 = arith.mulf %13, %13 : vector<128x32xf32>
    %cst_8 = arith.constant dense<0.000000e+00> : vector<128xf32>
    %15 = vector.multi_reduction <add>, %14, %cst_8 [1] : vector<128x32xf32> to vector<128xf32>
    %16 = vector.shape_cast %15 : vector<128xf32> to vector<128x1xf32>
    %17 = tpu.transpose %12, [1, 0] : vector<128x1xf32> -> vector<1x128xf32>
    %18 = tpu.transpose %16, [1, 0] : vector<128x1xf32> -> vector<1x128xf32>
    %19 = math.sqrt %18 : vector<1x128xf32>
    %20 = vector.broadcast %9 : vector<8x1xf32> to vector<8x128xf32>
    %21 = vector.broadcast %17 : vector<1x128xf32> to vector<8x128xf32>
    %22 = arith.addf %20, %21 : vector<8x128xf32>
    %cst_9 = arith.constant 2.000000e+00 : f32
    %23 = vector.broadcast %cst_9 : f32 to vector<8x128xf32>
    %24 = arith.mulf %23, %6 : vector<8x128xf32>
    %25 = arith.subf %22, %24 : vector<8x128xf32>
    %cst_10 = arith.constant 0.000000e+00 : f32
    %26 = vector.broadcast %cst_10 : f32 to vector<8x128xf32>
    %27 = arith.maximumf %25, %26 : vector<8x128xf32>
    %28 = math.sqrt %27 : vector<8x128xf32>
    %29 = vector.broadcast %19 : vector<1x128xf32> to vector<8x128xf32>
    %30 = arith.subf %29, %28 : vector<8x128xf32>
    %cst_11 = arith.constant 3.000000e-01 : f32
    %31 = vector.broadcast %cst_11 : f32 to vector<8x128xf32>
    %32 = arith.addf %30, %31 : vector<8x128xf32>
    %cst_12 = arith.constant 0.000000e+00 : f32
    %33 = vector.broadcast %cst_12 : f32 to vector<8x128xf32>
    %34 = arith.maximumf %32, %33 : vector<8x128xf32>
    %c8_i32 = arith.constant 8 : i32
    %35 = arith.muli %arg0, %c8_i32 : i32
    %36 = tpu.iota {dimensions = array<i32: 0>} : vector<8x1xi32>
    %37 = vector.broadcast %35 : i32 to vector<8x1xi32>
    %38 = arith.addi %37, %36 : vector<8x1xi32>
    %c128_i32 = arith.constant 128 : i32
    %39 = arith.muli %arg1, %c128_i32 : i32
    %40 = tpu.iota {dimensions = array<i32: 1>} : vector<1x128xi32>
    %41 = vector.broadcast %39 : i32 to vector<1x128xi32>
    %42 = arith.addi %41, %40 : vector<1x128xi32>
    %43 = vector.broadcast %38 : vector<8x1xi32> to vector<8x128xi32>
    %44 = vector.broadcast %42 : vector<1x128xi32> to vector<8x128xi32>
    %45 = arith.cmpi ne, %43, %44 : vector<8x128xi32>
    %c8_i32_13 = arith.constant 8 : i32
    %46 = vector.broadcast %c8_i32_13 : i32 to vector<8x1xi32>
    %47 = arith.cmpi slt, %38, %46 : vector<8x1xi32>
    %48 = vector.broadcast %47 : vector<8x1xi1> to vector<8x128xi1>
    %49 = arith.andi %45, %48 : vector<8x128xi1>
    %c8_i32_14 = arith.constant 8 : i32
    %50 = vector.broadcast %c8_i32_14 : i32 to vector<1x128xi32>
    %51 = arith.cmpi slt, %42, %50 : vector<1x128xi32>
    %52 = vector.broadcast %51 : vector<1x128xi1> to vector<8x128xi1>
    %53 = arith.andi %49, %52 : vector<8x128xi1>
    %cst_15 = arith.constant 0.000000e+00 : f32
    %54 = vector.broadcast %cst_15 : f32 to vector<8x128xf32>
    %55 = arith.select %53, %34, %54 : vector<8x128xi1>, vector<8x128xf32>
    %c0_16 = arith.constant 0 : index
    %c0_17 = arith.constant 0 : index
    %56 = vector.load %arg6[%c0_16, %c0_17] : memref<8x1xf32, #tpu.memory_space<vmem>>, vector<8x1xf32>
    %cst_18 = arith.constant dense<0.000000e+00> : vector<8xf32>
    %57 = vector.multi_reduction <add>, %55, %cst_18 [1] : vector<8x128xf32> to vector<8xf32>
    %58 = vector.shape_cast %57 : vector<8xf32> to vector<8x1xf32>
    %59 = arith.addf %56, %58 : vector<8x1xf32>
    %c0_19 = arith.constant 0 : index
    %c0_20 = arith.constant 0 : index
    %60 = vector.load %arg6[%c0_19, %c0_20] : memref<8x1xf32, #tpu.memory_space<vmem>>, vector<8x1xf32>
    tpu.vector_store %arg6[%c0_19, %c0_20], %59 {strides = array<i32>} : memref<8x1xf32, #tpu.memory_space<vmem>>, vector<8x1xf32>,
    %c0_i32_21 = arith.constant 0 : i32
    %61 = arith.cmpi eq, %arg1, %c0_i32_21 : i32
    %62 = arith.extui %61 : i1 to i32
    %c0_i32_22 = arith.constant 0 : i32
    %63 = arith.cmpi ne, %62, %c0_i32_22 : i32
    scf.if %63 {
      %c0_23 = arith.constant 0 : index
      %c0_24 = arith.constant 0 : index
      %64 = vector.load %arg6[%c0_23, %c0_24] : memref<8x1xf32, #tpu.memory_space<vmem>>, vector<8x1xf32>
      %c0_25 = arith.constant 0 : index
      %c0_26 = arith.constant 0 : index
      %65 = vector.load %arg5[%c0_25, %c0_26] : memref<8x1xf32, #tpu.memory_space<vmem>>, vector<8x1xf32>
      tpu.vector_store %arg5[%c0_25, %c0_26], %64 {strides = array<i32>} : memref<8x1xf32, #tpu.memory_space<vmem>>, vector<8x1xf32>,
    } else {
    }
    return
  }
  func.func @transform_0(%arg0: i32, %arg1: i32) -> (i32, i32) {
    %c0_i32 = arith.constant 0 : i32
    %c0_i32_0 = arith.constant 0 : i32
    return %arg0, %c0_i32 : i32, i32
  }
  func.func @transform_1(%arg0: i32, %arg1: i32) -> (i32, i32) {
    %c0_i32 = arith.constant 0 : i32
    %c0_i32_0 = arith.constant 0 : i32
    return %arg1, %c0_i32 : i32, i32
  }
  func.func @transform_2(%arg0: i32, %arg1: i32) -> (i32, i32) {
    %c0_i32 = arith.constant 0 : i32
    %c0_i32_0 = arith.constant 0 : i32
    return %arg1, %c0_i32 : i32, i32
  }
  func.func @transform_3(%arg0: i32, %arg1: i32) -> (i32, i32) {
    %c0_i32 = arith.constant 0 : i32
    %c0_i32_0 = arith.constant 0 : i32
    return %arg0, %c0_i32 : i32, i32
  }
}

</mosaic_0001>

<bundles_post_ra>
// kernel: tpu_custom_call.1
= control target key start
LH: loop header
LB: loop body
LE: loop exit
PB: predicated region body
PF: predicated region fallthrough
CT: control target
= control target key end

     0   :  { %vm53_vm0 = vcmask 261120   ;;  %vm18_vm1 = vcmask 7168   ;;  %v559_v0 = vmov 0.0|0.0   ;;  %v560_v4 = vmov 0.0   ;;  %s751_s1 = inlined_call_operand.vmem [shape: f32[128,32], index: 1, kind: input, shape index: {}]   ;;  %s752_s2 = inlined_call_operand.vmem [shape: f32[128,32], index: 2, kind: input, shape index: {}]   ;;  %s753_s0 = inlined_call_operand.vmem [shape: f32[8,32], index: 0, kind: input, shape index: {}]   ;;  %s754_s3 = inlined_call_operand.vmem [shape: f32[8,1], index: 3, kind: output, shape index: {}]  }
   0x1   :  { %520 = vmatprep.subr.bf16.mxu0 %v559_v0  ;;  %v21_v1 = vld [vmem:[%s751_s1] sm:$0xff]  ;;  %v22_v2 = vld [vmem:[%s751_s1 + $0x8] sm:$0xff]  ;;  %vm591_vm2 = vmpackc.low %vm53_vm0, %vm53_vm0  ;;  %19 = vst.msk [vmem:[#allocation2] sm:$0xff] %vm18_vm1, %v560_v4  ;;  %vm561_vm3 = vmmov 0  }
   0x2   :  { %v521_v5 = vpack.c.bf16 %v22_v2, %v21_v1  ;;  %v179_v6 = vmul.f32 %v21_v1, %v21_v1  ;;  %v23_v7 = vld [vmem:[%s751_s1 + $0x10] sm:$0xff]  ;;  %v24_v8 = vld [vmem:[%s751_s1 + $0x18] sm:$0xff]  ;;  %v180_v9 = vmul.f32 %v22_v2, %v22_v2  ;;  %v37_v10 = vld [vmem:[%s752_s2] sm:$0xff]  ;;  %517 = vmatprep.mubr.msk.f32.mxu0 %vm561_vm3, %v560_v4 }
   0x3   :  { %v181_v11 = vmul.f32 %v23_v7, %v23_v7  ;;  %v182_v12 = vmul.f32 %v24_v8, %v24_v8  ;;  %v243_v13 = vsub.f32 %v21_v1, %v37_v10  ;;  %v38_v14 = vld [vmem:[%s752_s2 + $0x8] sm:$0xff]  ;;  %v25_v16 = vld [vmem:[%s751_s1 + $0x20] sm:$0xff]  ;;  %v39_v23 = vld [vmem:[%s752_s2 + $0x10] sm:$0xff]  ;;  %v525_v24 = vpack.c.bf16 %v24_v8, %v23_v7 }
   0x4   :  { %523 = vmatpush3.bf16.xpose.msk.msra.mxu0 %vm591_vm2, %v521_v5  ;;  %v195_v15 = vsel %vm53_vm0, %v179_v6, 0.0  ;;  %v198_v18 = vsel %vm53_vm0, %v180_v9, 0.0  ;;  %v244_v20 = vsub.f32 %v22_v2, %v38_v14  ;;  %v183_v22 = vmul.f32 %v25_v16, %v25_v16  ;;  %v26_v25 = vld [vmem:[%s751_s1 + $0x28] sm:$0xff]  ;;  %v40_v31 = vld [vmem:[%s752_s2 + $0x18] sm:$0xff]  ;;  %v27_v32 = vld [vmem:[%s751_s1 + $0x30] sm:$0xff] }
   0x5   :  { %196 = vadd.xlane.f32.xlu0 %v195_v15  ;;  %v201_v17 = vsel %vm53_vm0, %v181_v11, 0.0  ;;  %524 = vmatprep.subr.bf16.mxu0 %v559_v0  ;;  %v259_v19 = vmul.f32 %v243_v13, %v243_v13  ;;  %v204_v21 = vsel %vm53_vm0, %v182_v12, 0.0  ;;  %v245_v28 = vsub.f32 %v23_v7, %v39_v23  ;;  %v41_v38 = vld [vmem:[%s752_s2 + $0x20] sm:$0xff]  ;;  %v28_v40 = vld [vmem:[%s751_s1 + $0x38] sm:$0xff]  ;;  %v42_v46 = vld [vmem:[%s752_s2 + $0x28] sm:$0xff] }
   0x6   :  { %202 = vadd.xlane.f32.xlu1 %v201_v17  ;;  %v260_v27 = vmul.f32 %v244_v20, %v244_v20  ;;  %v207_v29 = vsel %vm53_vm0, %v183_v22, 0.0  ;;  %v184_v30 = vmul.f32 %v26_v25, %v26_v25  ;;  %v246_v35 = vsub.f32 %v24_v8, %v40_v31  ;;  %v29_v47 = vld [vmem:[%s751_s1 + $0x40] sm:$0xff]  ;;  %v43_v53 = vld [vmem:[%s752_s2 + $0x30] sm:$0xff]  ;;  %v30_v55 = vld [vmem:[%s751_s1 + $0x48] sm:$0xff] }
   0x7   :  { %v275_v26 = vsel %vm53_vm0, %v259_v19, 0.0  ;;  %v261_v34 = vmul.f32 %v245_v28, %v245_v28  ;;  %v185_v37 = vmul.f32 %v27_v32, %v27_v32  ;;  %v529_v39 = vpack.c.bf16 %v26_v25, %v25_v16  ;;  %v44_v61 = vld [vmem:[%s752_s2 + $0x38] sm:$0xff]  ;;  %v31_v62 = vld [vmem:[%s751_s1 + $0x50] sm:$0xff]  ;;  %v45_v6 = vld [vmem:[%s752_s2 + $0x40] sm:$0xff] }
   0x8   :  { %v278_v33 = vsel %vm53_vm0, %v260_v27, 0.0  ;;  %v210_v36 = vsel %vm53_vm0, %v184_v30, 0.0  ;;  %v262_v42 = vmul.f32 %v246_v35, %v246_v35  ;;  %v247_v43 = vsub.f32 %v25_v16, %v41_v38  ;;  %v32_v8 = vld [vmem:[%s751_s1 + $0x58] sm:$0xff]  ;;  %v46_v14 = vld [vmem:[%s752_s2 + $0x48] sm:$0xff]  ;;  %v33_v15 = vld [vmem:[%s751_s1 + $0x60] sm:$0xff] }
   0x9   :  { %199 = vadd.xlane.f32.xlu0 %v198_v18  ;;  %v281_v41 = vsel %vm53_vm0, %v261_v34, 0.0  ;;  %v213_v44 = vsel %vm53_vm0, %v185_v37, 0.0  ;;  %v186_v45 = vmul.f32 %v28_v40, %v28_v40  ;;  %v248_v50 = vsub.f32 %v26_v25, %v42_v46  ;;  %v34_v23 = vld [vmem:[%s751_s1 + $0x68] sm:$0xff]  ;;  %v35_v30 = vld [vmem:[%s751_s1 + $0x70] sm:$0xff]  ;;  %v36_v38 = vld [vmem:[%s751_s1 + $0x78] sm:$0xff] }
   0xa   :  { %205 = vadd.xlane.f32.xlu1 %v204_v21  ;;  %v284_v48 = vsel %vm53_vm0, %v262_v42, 0.0  ;;  %v263_v49 = vmul.f32 %v247_v43, %v247_v43  ;;  %v187_v52 = vmul.f32 %v29_v47, %v29_v47  ;;  %v533_v54 = vpack.c.bf16 %v28_v40, %v27_v32  ;;  %v47_v21 = vld [vmem:[%s752_s2 + $0x50] sm:$0xff] }
   0xb   :  { %v216_v51 = vsel %vm53_vm0, %v186_v45, 0.0  ;;  %v264_v57 = vmul.f32 %v248_v50, %v248_v50  ;;  %v249_v58 = vsub.f32 %v27_v32, %v43_v53  ;;  %v188_v60 = vmul.f32 %v30_v55, %v30_v55  ;;  %v51_v46 = vld [vmem:[%s752_s2 + $0x70] sm:$0xff] }
   0xc   :  { %527 = vmatpush3.bf16.xpose.msk.msra.mxu0 %vm591_vm2, %v525_v24  ;;  %v287_v56 = vsel %vm53_vm0, %v263_v49, 0.0  ;;  %v219_v59 = vsel %vm53_vm0, %v187_v52, 0.0  ;;  %v250_v2 = vsub.f32 %v28_v40, %v44_v61  ;;  %v189_v5 = vmul.f32 %v31_v62, %v31_v62 }
   0xd   :  { %276 = vadd.xlane.f32.xlu0 %v275_v26  ;;  %528 = vmatprep.subr.bf16.mxu0 %v559_v0  ;;  %v290_v63 = vsel %vm53_vm0, %v264_v57, 0.0  ;;  %v265_v1 = vmul.f32 %v249_v58, %v249_v58  ;;  %v222_v4 = vsel %vm53_vm0, %v188_v60, 0.0  ;;  %v537_v7 = vpack.c.bf16 %v30_v55, %v29_v47 }
   0xe   :  { %208 = vadd.xlane.f32.xlu1 %v207_v29  ;;  %v266_v10 = vmul.f32 %v250_v2, %v250_v2  ;;  %v251_v11 = vsub.f32 %v29_v47, %v45_v6  ;;  %v225_v12 = vsel %vm53_vm0, %v189_v5, 0.0  ;;  %v190_v13 = vmul.f32 %v32_v8, %v32_v8  ;;  %v48_v29 = vld [vmem:[%s752_s2 + $0x58] sm:$0xff] }
   0xf   :  { %v293_v9 = vsel %vm53_vm0, %v265_v1, 0.0  ;;  %v252_v18 = vsub.f32 %v30_v55, %v46_v14  ;;  %v191_v20 = vmul.f32 %v33_v15, %v33_v15  ;;  %v541_v22 = vpack.c.bf16 %v32_v8, %v31_v62  ;;  %v52_v47 = vld [vmem:[%s752_s2 + $0x78] sm:$0xff] }
  0x10   :  { %v296_v16 = vsel %vm53_vm0, %v266_v10, 0.0  ;;  %v267_v17 = vmul.f32 %v251_v11, %v251_v11  ;;  %v228_v19 = vsel %vm53_vm0, %v190_v13, 0.0  ;;  %v253_v26 = vsub.f32 %v31_v62, %v47_v21 }
  0x11   :  { %279 = vadd.xlane.f32.xlu0 %v278_v33  ;;  %v268_v25 = vmul.f32 %v252_v18, %v252_v18  ;;  %v231_v27 = vsel %vm53_vm0, %v191_v20, 0.0  ;;  %v192_v28 = vmul.f32 %v34_v23, %v34_v23  ;;  %v254_v33 = vsub.f32 %v32_v8, %v48_v29 }
  0x12   :  { %211 = vadd.xlane.f32.xlu1 %v210_v36  ;;  %v299_v24 = vsel %vm53_vm0, %v267_v17, 0.0  ;;  %v269_v32 = vmul.f32 %v253_v26, %v253_v26  ;;  %v193_v35 = vmul.f32 %v35_v30, %v35_v30  ;;  %v49_v36 = vld [vmem:[%s752_s2 + $0x60] sm:$0xff]  ;;  %v545_v37 = vpack.c.bf16 %v34_v23, %v33_v15 }
  0x13   :  { %v302_v31 = vsel %vm53_vm0, %v268_v25, 0.0  ;;  %v234_v34 = vsel %vm53_vm0, %v192_v28, 0.0  ;;  %v255_v42 = vsub.f32 %v33_v15, %v49_v36  ;;  %v257_v50 = vsub.f32 %v35_v30, %v51_v46 }
  0x14   :  { %531 = vmatpush3.bf16.xpose.msk.msra.mxu0 %vm591_vm2, %v529_v39  ;;  %v50_v39 = vld [vmem:[%s752_s2 + $0x68] sm:$0xff]  ;;  %v305_v40 = vsel %vm53_vm0, %v269_v32, 0.0  ;;  %v237_v43 = vsel %vm53_vm0, %v193_v35, 0.0  ;;  %v258_v53 = vsub.f32 %v36_v38, %v52_v47  ;;  %v394_v32 = vlaneseq }
  0x15   :  { %282 = vadd.xlane.f32.xlu0 %v281_v41  ;;  %532 = vmatprep.subr.bf16.mxu0 %v559_v0  ;;  %v270_v41 = vmul.f32 %v254_v33, %v254_v33  ;;  %v256_v45 = vsub.f32 %v34_v23, %v50_v39  ;;  %v271_v49 = vmul.f32 %v255_v42, %v255_v42 }
  0x16   :  { %214 = vadd.xlane.f32.xlu1 %v213_v44  ;;  %v194_v44 = vmul.f32 %v36_v38, %v36_v38  ;;  %v274_v58 = vmul.f32 %v258_v53, %v258_v53  ;;  %v395_v33 = vshrl.u32 %v394_v32, 7 }
  0x17   :  { %v272_v52 = vmul.f32 %v256_v45, %v256_v45  ;;  %v311_v55 = vsel %vm53_vm0, %v271_v49, 0.0 }
  0x18   :  { %v320_v61 = vsel %vm53_vm0, %v274_v58, 0.0 }
  0x19   :  { %285 = vadd.xlane.f32.xlu0 %v284_v48  ;;  %v308_v48 = vsel %vm53_vm0, %v270_v41, 0.0  ;;  %v314_v57 = vsel %vm53_vm0, %v272_v52, 0.0 }
  0x1a   :  { %217 = vadd.xlane.f32.xlu1 %v216_v51  ;;  %v240_v51 = vsel %vm53_vm0, %v194_v44, 0.0 }
  0x1c   :  { %535 = vmatpush3.bf16.xpose.msk.msra.mxu0 %vm591_vm2, %v533_v54  ;;  %v549_v54 = vpack.c.bf16 %v36_v38, %v35_v30 }
  0x1d   :  { %288 = vadd.xlane.f32.xlu0 %v287_v56  ;;  %536 = vmatprep.subr.bf16.mxu0 %v559_v0  ;;  %v273_v56 = vmul.f32 %v257_v50, %v257_v50  ;;  %v423_v50 = vand.u32 127, %v394_v32 }
  0x1e   :  { %220 = vadd.xlane.f32.xlu1 %v219_v59 }
  0x1f   :  { %v317_v59 = vsel %vm53_vm0, %v273_v56, 0.0  ;;  %vm426_vm8 = vcmp.ne.s32.totalorder %v395_v33, %v423_v50  ;;  %vm431_vm9 = vcmp.lt.s32.totalorder %v423_v50, 8 }
  0x20   :  { %vm434_vm10 = vmand %vm426_vm8, %vm431_vm9 }
  0x21   :  { %291 = vadd.xlane.f32.xlu0 %v290_v63 }
  0x22   :  { %223 = vadd.xlane.f32.xlu1 %v222_v4 }
  0x24   :  { %539 = vmatpush3.bf16.xpose.msk.msra.mxu0 %vm591_vm2, %v537_v7 }
  0x25   :  { %294 = vadd.xlane.f32.xlu0 %v293_v9  ;;  %540 = vmatprep.subr.bf16.mxu0 %v559_v0 }
  0x26   :  { %226 = vadd.xlane.f32.xlu1 %v225_v12 }
  0x29   :  { %297 = vadd.xlane.f32.xlu0 %v296_v16 }
  0x2a   :  { %229 = vadd.xlane.f32.xlu1 %v228_v19 }
  0x2c   :  { %543 = vmatpush3.bf16.xpose.msk.msra.mxu0 %vm591_vm2, %v541_v22 }
  0x2d   :  { %300 = vadd.xlane.f32.xlu0 %v299_v24  ;;  %544 = vmatprep.subr.bf16.mxu0 %v559_v0 }
  0x2e   :  { %232 = vadd.xlane.f32.xlu1 %v231_v27 }
  0x31   :  { %303 = vadd.xlane.f32.xlu0 %v302_v31 }
  0x32   :  { %235 = vadd.xlane.f32.xlu1 %v234_v34  ;;  %v396_v34 = vsub.s32 0, %v395_v33 }
  0x34   :  { %547 = vmatpush3.bf16.xpose.msk.msra.mxu0 %vm591_vm2, %v545_v37 }
  0x35   :  { %306 = vadd.xlane.f32.xlu0 %v305_v40  ;;  %548 = vmatprep.subr.bf16.mxu0 %v559_v0  ;;  %v20_v0 = vld [vmem:[%s753_s0] sm:$0xff] }
  0x36   :  { %238 = vadd.xlane.f32.xlu1 %v237_v43  ;;  %v175_v60 = vmul.f32 %v20_v0, %v20_v0 }
  0x38   :  { %v176_v62 = vsel %vm53_vm0, %v175_v60, 0.0  ;;  %v436_v60 = vld [vmem:[#allocation2] sm:$0xff] }
  0x39   :  { %309 = vadd.xlane.f32.xlu0 %v308_v48 }
  0x3a   :  { %241 = vadd.xlane.f32.xlu1 %v240_v51 }
  0x3c   :  { %551 = vmatpush3.bf16.xpose.msk.msra.mxu0 %vm591_vm2, %v549_v54 }
  0x3d   :  { %312 = vadd.xlane.f32.xlu0 %v311_v55 }
  0x3e   :  { %315 = vadd.xlane.f32.xlu1 %v314_v57 }
  0x41   :  { %318 = vadd.xlane.f32.xlu0 %v317_v59 }
  0x42   :  { %321 = vadd.xlane.f32.xlu1 %v320_v61 }
  0x43   :  { %518 = vmatmul.mubr.msk.f32.vlgmr.msra.gmra.mrb[0].mxu0 %vm53_vm0, %v20_v0 }
  0x45   :  { %177 = vadd.xlane.f32.xlu0 %v176_v62 }
  0x92   :  { %v197_v3 = vpop.xlane.xlu0 %196 }
  0x93   :  { %323 = vxpose.xlu1.b32.start [1/16] (narrow) %v197_v3, 8  ;;  %v203_v63 = vpop.xlane.xlu1 %202 }
  0x96   :  { %v200_v1 = vpop.xlane.xlu0 %199 }
  0x97   :  { %324 = vxpose.xlu1.b32.cont [2/16] (narrow) %v200_v1, 8  ;;  %v206_v2 = vpop.xlane.xlu1 %205 }
  0x9a   :  { %v277_v4 = vpop.xlane.xlu0 %276 }
  0x9b   :  { %325 = vxpose.xlu1.b32.cont [3/16] (narrow) %v203_v63, 8  ;;  %355 = vxpose.xlu0.b32.start [1/16] (narrow) %v277_v4, 8  ;;  %v209_v5 = vpop.xlane.xlu1 %208 }
  0x9e   :  { %v280_v6 = vpop.xlane.xlu0 %279 }
  0x9f   :  { %326 = vxpose.xlu1.b32.cont [4/16] (narrow) %v206_v2, 8  ;;  %356 = vxpose.xlu0.b32.cont [2/16] (narrow) %v280_v6, 8  ;;  %v212_v7 = vpop.xlane.xlu1 %211 }
  0xa2   :  { %v283_v8 = vpop.xlane.xlu0 %282 }
  0xa3   :  { %327 = vxpose.xlu1.b32.cont [5/16] (narrow) %v209_v5, 8  ;;  %357 = vxpose.xlu0.b32.cont [3/16] (narrow) %v283_v8, 8  ;;  %v215_v9 = vpop.xlane.xlu1 %214 }
  0xa6   :  { %v286_v10 = vpop.xlane.xlu0 %285 }
  0xa7   :  { %328 = vxpose.xlu1.b32.cont [6/16] (narrow) %v212_v7, 8  ;;  %358 = vxpose.xlu0.b32.cont [4/16] (narrow) %v286_v10, 8  ;;  %v218_v11 = vpop.xlane.xlu1 %217 }
  0xaa   :  { %v289_v12 = vpop.xlane.xlu0 %288 }
  0xab   :  { %329 = vxpose.xlu1.b32.cont [7/16] (narrow) %v215_v9, 8  ;;  %359 = vxpose.xlu0.b32.cont [5/16] (narrow) %v289_v12, 8  ;;  %v221_v13 = vpop.xlane.xlu1 %220 }
  0xae   :  { %v292_v14 = vpop.xlane.xlu0 %291 }
  0xaf   :  { %330 = vxpose.xlu1.b32.cont [8/16] (narrow) %v218_v11, 8  ;;  %360 = vxpose.xlu0.b32.cont [6/16] (narrow) %v292_v14, 8  ;;  %v224_v15 = vpop.xlane.xlu1 %223 }
  0xb2   :  { %v295_v16 = vpop.xlane.xlu0 %294 }
  0xb3   :  { %331 = vxpose.xlu1.b32.cont [9/16] (narrow) %v221_v13, 8  ;;  %361 = vxpose.xlu0.b32.cont [7/16] (narrow) %v295_v16, 8  ;;  %v227_v17 = vpop.xlane.xlu1 %226 }
  0xb6   :  { %v298_v18 = vpop.xlane.xlu0 %297 }
  0xb7   :  { %332 = vxpose.xlu1.b32.cont [10/16] (narrow) %v224_v15, 8  ;;  %362 = vxpose.xlu0.b32.cont [8/16] (narrow) %v298_v18, 8  ;;  %v230_v19 = vpop.xlane.xlu1 %229 }
  0xba   :  { %v301_v20 = vpop.xlane.xlu0 %300 }
  0xbb   :  { %333 = vxpose.xlu1.b32.cont [11/16] (narrow) %v227_v17, 8  ;;  %363 = vxpose.xlu0.b32.cont [9/16] (narrow) %v301_v20, 8  ;;  %v233_v21 = vpop.xlane.xlu1 %232 }
  0xbe   :  { %v304_v22 = vpop.xlane.xlu0 %303 }
  0xbf   :  { %334 = vxpose.xlu1.b32.cont [12/16] (narrow) %v230_v19, 8  ;;  %364 = vxpose.xlu0.b32.cont [10/16] (narrow) %v304_v22, 8  ;;  %v236_v23 = vpop.xlane.xlu1 %235 }
  0xc2   :  { %v307_v24 = vpop.xlane.xlu0 %306 }
  0xc3   :  { %335 = vxpose.xlu1.b32.cont [13/16] (narrow) %v233_v21, 8  ;;  %365 = vxpose.xlu0.b32.cont [11/16] (narrow) %v307_v24, 8  ;;  %v239_v25 = vpop.xlane.xlu1 %238 }
  0xc6   :  { %v310_v26 = vpop.xlane.xlu0 %309 }
  0xc7   :  { %336 = vxpose.xlu1.b32.cont [14/16] (narrow) %v236_v23, 8  ;;  %366 = vxpose.xlu0.b32.cont [12/16] (narrow) %v310_v26, 8  ;;  %v242_v27 = vpop.xlane.xlu1 %241 }
  0xca   :  { %v313_v28 = vpop.xlane.xlu0 %312 }
  0xcb   :  { %337 = vxpose.xlu1.b32.cont [15/16] (narrow) %v239_v25, 8  ;;  %367 = vxpose.xlu0.b32.cont [13/16] (narrow) %v313_v28, 8  ;;  %v316_v29 = vpop.xlane.xlu1 %315 }
  0xce   :  { %v319_v30 = vpop.xlane.xlu0 %318 }
  0xcf   :  { %338 = vxpose.xlu1.b32.end [16/16] (narrow) %v242_v27, 8  ;;  %368 = vxpose.xlu0.b32.cont [14/16] (narrow) %v316_v29, 8  ;;  %v322_v31 = vpop.xlane.xlu1 %321 }
  0xd2   :  { %v178_v37 = vpop.xlane.xlu0 %177 }
  0xd3   :  { %369 = vxpose.xlu0.b32.cont [15/16] (narrow) %v319_v30, 8 }
  0xd7   :  { %370 = vxpose.xlu0.b32.end [16/16] (narrow) %v322_v31, 8 }
 0x113   :  { %v339_v35 = vpop.trf.xlu1 }
 0x114   :  { %v397_v36 = vrot.slane %v339_v35, %v396_v34 }
 0x116   :  { %v398_v38 = vadd.f32 %v397_v36, %v178_v37  ;;  %v171_v39 = vpop.f32.mrb[0].mxu0 }
 0x117   :  { %v399_v40 = vmul.f32 2.0, %v171_v39  ;;  %v519_v41 = vpop.f32.mrb[1].mxu0 }
 0x119   :  { %v400_v42 = vsub.f32 %v398_v38, %v399_v40 }
 0x11b   :  { %v401_v43 = vmax.f32 %v400_v42, 0.0  ;;  %v371_v44 = vpop.trf.xlu0 }
 0x11c   :  { %555 = vrsqrt.f32 %v371_v44  ;;  %vm389_vm4 = vcmp.eq.f32.partialorder %v371_v44, inf  ;;  %v392_v48 = vand.u32 2147483648, %v371_v44  ;;  %vm391_vm5 = vcmp.eq.f32.partialorder %v371_v44, 0.0 }
 0x11d   :  { %557 = vrsqrt.f32 %v401_v43  ;;  %vm404_vm6 = vcmp.eq.f32.partialorder %v401_v43, inf  ;;  %v407_v52 = vand.u32 2147483648, %v401_v43  ;;  %vm406_vm7 = vcmp.eq.f32.partialorder %v401_v43, 0.0 }
 0x126   :  { %v556_v45 = vpop.eup %555 }
 0x127   :  { %v558_v46 = vpop.eup %557  ;;  %v388_v47 = vmul.f32 %v556_v45, %v371_v44 }
 0x128   :  { %v403_v49 = vmul.f32 %v558_v46, %v401_v43 }
 0x129   :  { %v390_v51 = vsel %vm389_vm4, %v371_v44, %v388_v47 }
 0x12a   :  { %v393_v53 = vsel %vm391_vm5, %v392_v48, %v390_v51  ;;  %v405_v54 = vsel %vm404_vm6, %v401_v43, %v403_v49 }
 0x12b   :  { %v408_v55 = vsel %vm406_vm7, %v407_v52, %v405_v54  ;;  %v412_v56 = vrot.slane %v393_v53, %v396_v34 }
 0x12d   :  { %v413_v57 = vsub.f32 %v412_v56, %v408_v55 }
 0x12f   :  { %v414_v58 = vadd.f32 0.3, %v413_v57 }
 0x131   :  { %v415_v0 = vmax.f32 %v414_v58, 0.0 }
 0x133   :  { %v435_v59 = vsel %vm434_vm10, %v415_v0, 0.0 }
 0x134   :  { %437 = vadd.xlane.f32.xlu0 %v435_v59 }
 0x1c1   :  { %v438_v61 = vpop.xlane.xlu0 %437 }
 0x1c2   :  { %v439_v62 = vadd.f32 %v438_v61, %v436_v60 }
 0x1c4   :  { %441 = vst.msk [vmem:[#allocation2] sm:$0xff] %vm18_vm1, %v439_v62 }
 0x1cb   :  { %v445_v3 = vld [vmem:[#allocation2] sm:$0xff] }
 0x1cc   :  { %446 = vst.msk [vmem:[%s754_s3] sm:$0xff] %vm18_vm1, %v445_v3 }

</bundles_post_ra>
